<compile_context>
chip_gen: v7x
topology: tpu7x:2x2x1
jax: 0.10.0
libtpu: 0.0.40
codegen_flags: <defaults>
</compile_context>

<pallas_src>
import math

import jax
import jax.numpy as jnp
from jax import lax
from jax.experimental import pallas as pl
from jax.experimental.pallas import tpu as pltpu

BN_EPS = 1e-5                        # torch.nn.BatchNorm2d default eps
TILE_PACKED_ROWS_MAX = 4096          # packed rows per grid step (multiple of 8)
VMEM_LIMIT_BYTES = 48 * 1024 * 1024  # > v5e/v6e scoped defaults, < v7x 64 MiB physical


# ---------------------------------------------------------------------------
# kernels
# ---------------------------------------------------------------------------
def _write_stats(val_f32, stat_ref, *, tm, n_rows, pack, width, need_mask):
    """Merged per-tile masked [sum ; sum-of-squares] over rows for global BN stats."""
    lanes = val_f32.shape[1]
    if need_mask:
        # original row = pack * packed_row + lane_block ; mask rows >= n_rows.
        prow = pl.program_id(0) * tm + lax.broadcasted_iota(jnp.int32, (tm, lanes), 0)
        blk = lax.broadcasted_iota(jnp.int32, (tm, lanes), 1) // width
        orig_row = prow * pack + blk
        # select-based masking: NaN/Inf-safe for OOB garbage rows of the last tile.
        val_f32 = jnp.where(orig_row < n_rows, val_f32, 0.0)
    s = jnp.sum(val_f32, axis=0, keepdims=True)              # (1, lanes)
    q = jnp.sum(val_f32 * val_f32, axis=0, keepdims=True)    # (1, lanes)
    sel = lax.broadcasted_iota(jnp.int32, (2, lanes), 0) == 0
    stat_ref[0] = jnp.where(sel, s, q)                       # (2, lanes) merged block


def _make_lift_kernel(tm, n_rows, pack, width, need_mask):
    """fc0 -> relu -> fc1 -> relu -> (fc2 folded into conv0) ; emit BN0 stats."""
    def kernel(x_ref, w0_ref, b0_ref, w1_ref, b1_ref, wc_ref, bc_ref,
               y_ref, stat_ref):
        f32, bf16 = jnp.float32, jnp.bfloat16
        # fc0: bf16 input against the block-diagonal (zero-padded 28->32) weight.
        h = jnp.dot(x_ref[...], w0_ref[...], preferred_element_type=f32) + b0_ref[...]
        h = jnp.maximum(h, 0.0)
        h = jnp.dot(h.astype(bf16), w1_ref[...], preferred_element_type=f32) + b1_ref[...]
        h = jnp.maximum(h, 0.0)
        # fc2 and the first 1x1 conv are pre-folded into (wc, bc).
        y = jnp.dot(h.astype(bf16), wc_ref[...], preferred_element_type=f32) + bc_ref[...]
        y_bf = y.astype(bf16)
        y_ref[...] = y_bf
        _write_stats(y_bf.astype(f32), stat_ref, tm=tm, n_rows=n_rows,
                     pack=pack, width=width, need_mask=need_mask)
    return kernel


def _make_bn_conv_kernel(tm, n_rows, pack, width, need_mask):
    """BN(prev, global stats) -> relu -> 1x1 conv ; emit next-layer BN stats."""
    def kernel(y_ref, a_ref, d_ref, w_ref, b_ref, o_ref, stat_ref):
        f32, bf16 = jnp.float32, jnp.bfloat16
        y = y_ref[...].astype(f32)
        z = jnp.maximum(y * a_ref[...] + d_ref[...], 0.0)     # BN affine + ReLU (f32)
        v = jnp.dot(z.astype(bf16), w_ref[...], preferred_element_type=f32) + b_ref[...]
        v_bf = v.astype(bf16)
        o_ref[...] = v_bf
        _write_stats(v_bf.astype(f32), stat_ref, tm=tm, n_rows=n_rows,
                     pack=pack, width=width, need_mask=need_mask)
    return kernel


def _make_head_kernel():
    """BN3 -> fc3 -> relu -> fc4 (block-structured (L, pack) projection)."""
    def kernel(y_ref, a_ref, d_ref, w3_ref, b3_ref, w4_ref, b4_ref, o_ref):
        f32, bf16 = jnp.float32, jnp.bfloat16
        z = y_ref[...].astype(f32) * a_ref[...] + d_ref[...]  # BN3, no ReLU before fc3
        h = jnp.maximum(
            jnp.dot(z.astype(bf16), w3_ref[...], preferred_element_type=f32) + b3_ref[...],
            0.0)
        # fc4 as one block-structured (Lq, pack) dot: output (tm, pack) — 4x denser
        # than a (tm, 1) column and no N=1 MXU matmul.
        o_ref[...] = jnp.dot(h.astype(bf16), w4_ref[...],
                             preferred_element_type=f32) + b4_ref[...]
    return kernel


# ---------------------------------------------------------------------------
# parameters
# ---------------------------------------------------------------------------
def init_params(key, width, q_width, in_ch=28):
    """Deterministic PyTorch-style (uniform +-1/sqrt(fan_in)) initialization."""
    ks = list(jax.random.split(key, 9))

    def linear(k, fan_in, fan_out):
        bound = 1.0 / math.sqrt(fan_in)
        kw, kb = jax.random.split(k)
        wt = jax.random.uniform(kw, (fan_in, fan_out), jnp.float32, -bound, bound)
        b = jax.random.uniform(kb, (1, fan_out), jnp.float32, -bound, bound)
        return wt, b

    fc0_w, fc0_b = linear(ks[0], in_ch, width)
    fc1_w, fc1_b = linear(ks[1], width, width)
    fc2_w, fc2_b = linear(ks[2], width, width)

    cws, cbs = [], []
    for i in range(4):                       # w0..w3: 1x1 Conv1d == channel matmul
        wt, b = linear(ks[3 + i], width, width)
        cws.append(wt)
        cbs.append(b)
    cw = jnp.stack(cws)                      # (4, W, W) stored as (Cin, Cout)
    cb = jnp.stack(cbs)                      # (4, 1, W)
    bn_g = jnp.ones((4, 1, width), jnp.float32)   # BatchNorm2d affine defaults
    bn_b = jnp.zeros((4, 1, width), jnp.float32)

    fc3_w, fc3_b = linear(ks[7], width, q_width)
    fc4_w, fc4_b = linear(ks[8], q_width, 1)

    return dict(fc0_w=fc0_w, fc0_b=fc0_b, fc1_w=fc1_w, fc1_b=fc1_b,
                fc2_w=fc2_w, fc2_b=fc2_b, cw=cw, cb=cb, bn_g=bn_g, bn_b=bn_b,
                fc3_w=fc3_w, fc3_b=fc3_b, fc4_w=fc4_w, fc4_b=fc4_b)


# ---------------------------------------------------------------------------
# forward
# ---------------------------------------------------------------------------
def _const_spec(shape):
    zeros = (0,) * len(shape)
    return pl.BlockSpec(tuple(shape), lambda i: zeros)


def net2d_forward(x, p, tile_rows=TILE_PACKED_ROWS_MAX):
    """x: (B, X, T, 28) float32 -> (B, X, T) float32 (matches torch .squeeze())."""
    B, X, T, C = x.shape
    n = B * X * T
    w = p["fc0_w"].shape[1]
    qw = p["fc3_w"].shape[1]
    f32, bf16 = jnp.float32, jnp.bfloat16

    # Lane-dense packing: put `pack` consecutive rows' channels on the lane axis.
    pack = 128 // w if (w <= 128 and 128 % w == 0) else 1
    Cp = max(C, w) if pack > 1 else C        # pad input channels to the block size
    n_pad = -(-n // pack) * pack
    n_p = n_pad // pack                      # packed row count

    tm = n_p if n_p <= tile_rows else tile_rows
    num_tiles = pl.cdiv(n_p, tm)
    need_mask = (n_pad != n) or (n_p % tm != 0)
    grid = (num_tiles,)
    cparams = pltpu.CompilerParams(
        dimension_semantics=("parallel",),
        vmem_limit_bytes=VMEM_LIMIT_BYTES)

    L = pack * w          # activation lane width (128 for w=32)
    Lin = pack * Cp       # packed-input lane width
    Lq = pack * qw        # packed hidden lane width of the head

    # --- pack input (bf16, lane-dense) ---------------------------------------
    xr = x.reshape(n, C)
    if Cp != C:
        xr = jnp.pad(xr, ((0, 0), (0, Cp - C)))
    if n_pad != n:
        xr = jnp.pad(xr, ((0, n_pad - n), (0, 0)))
    x_packed = xr.reshape(n_p, Lin).astype(bf16)

    # --- block-diagonal weights / tiled vectors -------------------------------
    eyeP = jnp.eye(pack, dtype=f32)

    def bd(m):            # (a, b) -> block-diagonal (pack*a, pack*b)
        return jnp.kron(eyeP, m.astype(f32))

    def rep(v):           # (1, b) or (b,) -> (1, pack*b)
        return jnp.tile(v.reshape(1, -1), (1, pack))

    w0p = p["fc0_w"]
    if Cp != C:
        w0p = jnp.pad(w0p, ((0, Cp - C), (0, 0)))
    fc0_w = bd(w0p).astype(bf16)
    fc0_b = rep(p["fc0_b"]).astype(f32)
    fc1_w = bd(p["fc1_w"]).astype(bf16)
    fc1_b = rep(p["fc1_b"]).astype(f32)
    # Fold fc2 into conv0 (no ReLU between them).
    wc0_small = p["fc2_w"] @ p["cw"][0]
    bc0_small = p["fc2_b"] @ p["cw"][0] + p["cb"][0]
    conv_w = [bd(wc0_small).astype(bf16)] + [bd(p["cw"][i]).astype(bf16) for i in range(1, 4)]
    conv_b = [rep(bc0_small).astype(f32)] + [rep(p["cb"][i]).astype(f32) for i in range(1, 4)]
    fc3_w = bd(p["fc3_w"]).astype(bf16)
    fc3_b = rep(p["fc3_b"]).astype(f32)
    fc4_w = bd(p["fc4_w"]).astype(bf16)      # (Lq, pack)
    fc4_b = rep(p["fc4_b"]).astype(f32)      # (1, pack)

    # --- specs -----------------------------------------------------------------
    x_spec = pl.BlockSpec((tm, Lin), lambda i: (i, 0))
    act_spec = pl.BlockSpec((tm, L), lambda i: (i, 0))
    stat_spec = pl.BlockSpec((1, 2, L), lambda i: (i, 0, 0))
    act_shape = jax.ShapeDtypeStruct((n_p, L), bf16)
    stat_shape = jax.ShapeDtypeStruct((num_tiles, 2, L), f32)

    # Valid original-row count per tile (for the pooled-variance combine).
    counts = jnp.clip(n - jnp.arange(num_tiles) * (tm * pack), 0, tm * pack).astype(f32)

    def bn_affine(stats, gamma, beta):
        # Fold the `pack` lane replicas back to `w` channels, then do a pooled
        # (Chan-style) mean/M2 combine across tiles to avoid E[x^2]-mean^2
        # cancellation on large N.
        s = stats.reshape(num_tiles, 2, pack, w).sum(axis=2)   # (tiles, 2, w)
        c = counts[:, None]
        m_t = s[:, 0] / c
        m2_t = jnp.maximum(s[:, 1] - c * m_t * m_t, 0.0)
        mean = jnp.sum(s[:, 0], axis=0) / n
        m2 = jnp.sum(m2_t, axis=0) + jnp.sum(c * jnp.square(m_t - mean), axis=0)
        var = jnp.maximum(m2 / n, 0.0)
        a = gamma.reshape(-1) * lax.rsqrt(var + BN_EPS)
        d = beta.reshape(-1) - mean * a
        return rep(a).astype(f32), rep(d).astype(f32)

    # --- segment 0: lift (fc0, fc1, fc2xconv0) + BN0 stats --------------------
    y, stats = pl.pallas_call(
        _make_lift_kernel(tm, n, pack, w, need_mask),
        grid=grid,
        in_specs=[x_spec,
                  _const_spec(fc0_w.shape), _const_spec(fc0_b.shape),
                  _const_spec(fc1_w.shape), _const_spec(fc1_b.shape),
                  _const_spec(conv_w[0].shape), _const_spec(conv_b[0].shape)],
        out_specs=[act_spec, stat_spec],
        out_shape=[act_shape, stat_shape],
        compiler_params=cparams,
    )(x_packed, fc0_w, fc0_b, fc1_w, fc1_b, conv_w[0], conv_b[0])

    # --- segments 1..3: BN_i + relu + conv_{i+1} + BN_{i+1} stats --------------
    bn_conv_kernel = _make_bn_conv_kernel(tm, n, pack, w, need_mask)
    for i in range(3):
        a, d = bn_affine(stats, p["bn_g"][i], p["bn_b"][i])
        y, stats = pl.pallas_call(
            bn_conv_kernel,
            grid=grid,
            in_specs=[act_spec,
                      _const_spec((1, L)), _const_spec((1, L)),
                      _const_spec((L, L)), _const_spec((1, L))],
            out_specs=[act_spec, stat_spec],
            out_shape=[act_shape, stat_shape],
            compiler_params=cparams,
        )(y, a, d, conv_w[i + 1], conv_b[i + 1])

    # --- segment 4: BN3 + fc3 + relu + fc4 -------------------------------------
    a, d = bn_affine(stats, p["bn_g"][3], p["bn_b"][3])
    out = pl.pallas_call(
        _make_head_kernel(),
        grid=grid,
        in_specs=[act_spec,
                  _const_spec((1, L)), _const_spec((1, L)),
                  _const_spec(fc3_w.shape), _const_spec(fc3_b.shape),
                  _const_spec(fc4_w.shape), _const_spec(fc4_b.shape)],
        out_specs=pl.BlockSpec((tm, pack), lambda i: (i, 0)),
        out_shape=jax.ShapeDtypeStruct((n_p, pack), f32),
        compiler_params=cparams,
    )(y, a, d, fc3_w, fc3_b, fc4_w, fc4_b)

    out = out.reshape(n_pad)[:n]
    return jnp.squeeze(out.reshape(B, X, T, 1))


# ---------------------------------------------------------------------------
# pure-JAX reference mirroring the kernel's precision choices (bf16 matmuls incl.
# fc0, f32 BN on the bf16-rounded activations, fc2 folded into conv0).
# ---------------------------------------------------------------------------
def net2d_reference(x, p):
    B, X, T, C = x.shape
    n = B * X * T
    f32, bf16 = jnp.float32, jnp.bfloat16
    h = x.reshape(n, C)
    h = jax.nn.relu(jnp.dot(h.astype(bf16), p["fc0_w"].astype(bf16),
                            preferred_element_type=f32) + p["fc0_b"])
    h = jax.nn.relu(jnp.dot(h.astype(bf16), p["fc1_w"].astype(bf16),
                            preferred_element_type=f32) + p["fc1_b"])
    wc0 = (p["fc2_w"] @ p["cw"][0]).astype(bf16)
    bc0 = p["fc2_b"] @ p["cw"][0] + p["cb"][0]
    y = (jnp.dot(h.astype(bf16), wc0, preferred_element_type=f32) + bc0).astype(bf16)

    def bn(ysf, gamma, beta):
        mean = jnp.sum(ysf, axis=0) / n
        var = jnp.maximum(jnp.sum(ysf * ysf, axis=0) / n - mean * mean, 0.0)
        a = gamma.reshape(-1) * lax.rsqrt(var + BN_EPS)
        d = beta.reshape(-1) - mean * a
        return ysf * a + d

    for i in range(3):
        z = jax.nn.relu(bn(y.astype(f32), p["bn_g"][i], p["bn_b"][i]))
        y = (jnp.dot(z.astype(bf16), p["cw"][i + 1].astype(bf16),
                     preferred_element_type=f32) + p["cb"][i + 1]).astype(bf16)
    z = bn(y.astype(f32), p["bn_g"][3], p["bn_b"][3])
    h = jax.nn.relu(jnp.dot(z.astype(bf16), p["fc3_w"].astype(bf16),
                            preferred_element_type=f32) + p["fc3_b"])
    out = jnp.dot(h.astype(bf16), p["fc4_w"].astype(bf16),
                  preferred_element_type=f32) + p["fc4_b"]
    return jnp.squeeze(out.reshape(B, X, T, 1))


if __name__ == "__main__":
    # Small shapes consistent with the module: (batch, x, t, c=28)
    B, X, T, C = 2, 16, 8, 28
    width, q_width = 32, 32
    modes_x, modes_t = 4, 4  # unused: spectral-conv branch is dead code in forward

    key = jax.random.PRNGKey(0)
    k_x, k_p = jax.random.split(key)
    x = jax.random.normal(k_x, (B, X, T, C), jnp.float32)
    params = init_params(k_p, width, q_width, in_ch=C)

    fwd = jax.jit(net2d_forward)
    out = jax.block_until_ready(fwd(x, params))
    ref = jax.block_until_ready(net2d_reference(x, params))

    assert out.shape == (B, X, T), out.shape
    assert jnp.allclose(out, ref, rtol=1e-2, atol=1e-2), \
        float(jnp.max(jnp.abs(out - ref)))
    print("KERNEL_OK")
</pallas_src>

<mosaic_0001>
module attributes {stable_mosaic.version = 11 : i64} {
  func.func @kernel(%arg0: i32, %arg1: memref<64x128xbf16, #tpu.memory_space<vmem>>, %arg2: memref<128x128xbf16, #tpu.memory_space<vmem>>, %arg3: memref<1x128xf32, #tpu.memory_space<vmem>>, %arg4: memref<128x128xbf16, #tpu.memory_space<vmem>>, %arg5: memref<1x128xf32, #tpu.memory_space<vmem>>, %arg6: memref<128x128xbf16, #tpu.memory_space<vmem>>, %arg7: memref<1x128xf32, #tpu.memory_space<vmem>>, %arg8: memref<64x128xbf16, #tpu.memory_space<vmem>>, %arg9: memref<1x2x128xf32, #tpu.memory_space<vmem>>) attributes {dimension_semantics = [#tpu.dimension_semantics<parallel>], iteration_bounds = array<i64: 1>, scalar_prefetch = 0 : i64, scratch_operands = 0 : i64, tpu.core_type = #tpu.core_type<tc>, window_params = [{transform_indices = @transform_0, window_bounds = array<i64: 64, 128>}, {pipeline_mode = #tpu.pipeline_mode<synchronous>, transform_indices = @transform_1, window_bounds = array<i64: 128, 128>}, {pipeline_mode = #tpu.pipeline_mode<synchronous>, transform_indices = @transform_2, window_bounds = array<i64: 1, 128>}, {pipeline_mode = #tpu.pipeline_mode<synchronous>, transform_indices = @transform_3, window_bounds = array<i64: 128, 128>}, {pipeline_mode = #tpu.pipeline_mode<synchronous>, transform_indices = @transform_4, window_bounds = array<i64: 1, 128>}, {pipeline_mode = #tpu.pipeline_mode<synchronous>, transform_indices = @transform_5, window_bounds = array<i64: 128, 128>}, {pipeline_mode = #tpu.pipeline_mode<synchronous>, transform_indices = @transform_6, window_bounds = array<i64: 1, 128>}, {transform_indices = @transform_7, window_bounds = array<i64: 64, 128>}, {transform_indices = @transform_8, window_bounds = array<i64: 1, 2, 128>}]} {
    %c0 = arith.constant 0 : index
    %c0_0 = arith.constant 0 : index
    %0 = vector.load %arg1[%c0, %c0_0] : memref<64x128xbf16, #tpu.memory_space<vmem>>, vector<64x128xbf16>
    %c0_1 = arith.constant 0 : index
    %c0_2 = arith.constant 0 : index
    %1 = vector.load %arg2[%c0_1, %c0_2] : memref<128x128xbf16, #tpu.memory_space<vmem>>, vector<128x128xbf16>
    %cst = arith.constant dense<0.000000e+00> : vector<64x128xf32>
    %2 = tpu.matmul %0, %1, %cst {dimension_numbers = #tpu.dot_dimension_numbers<[1], [0], [0], [1], [0, 0, 1, 1], [], []>} : vector<64x128xbf16>, vector<128x128xbf16>, vector<64x128xf32> -> vector<64x128xf32>
    %c0_3 = arith.constant 0 : index
    %c0_4 = arith.constant 0 : index
    %3 = vector.load %arg3[%c0_3, %c0_4] : memref<1x128xf32, #tpu.memory_space<vmem>>, vector<1x128xf32>
    %4 = vector.broadcast %3 : vector<1x128xf32> to vector<64x128xf32>
    %5 = arith.addf %2, %4 : vector<64x128xf32>
    %cst_5 = arith.constant 0.000000e+00 : f32
    %6 = vector.broadcast %cst_5 : f32 to vector<64x128xf32>
    %7 = arith.maximumf %5, %6 : vector<64x128xf32>
    %8 = arith.truncf %7 : vector<64x128xf32> to vector<64x128xbf16>
    %c0_6 = arith.constant 0 : index
    %c0_7 = arith.constant 0 : index
    %9 = vector.load %arg4[%c0_6, %c0_7] : memref<128x128xbf16, #tpu.memory_space<vmem>>, vector<128x128xbf16>
    %cst_8 = arith.constant dense<0.000000e+00> : vector<64x128xf32>
    %10 = tpu.matmul %8, %9, %cst_8 {dimension_numbers = #tpu.dot_dimension_numbers<[1], [0], [0], [1], [0, 0, 1, 1], [], []>} : vector<64x128xbf16>, vector<128x128xbf16>, vector<64x128xf32> -> vector<64x128xf32>
    %c0_9 = arith.constant 0 : index
    %c0_10 = arith.constant 0 : index
    %11 = vector.load %arg5[%c0_9, %c0_10] : memref<1x128xf32, #tpu.memory_space<vmem>>, vector<1x128xf32>
    %12 = vector.broadcast %11 : vector<1x128xf32> to vector<64x128xf32>
    %13 = arith.addf %10, %12 : vector<64x128xf32>
    %cst_11 = arith.constant 0.000000e+00 : f32
    %14 = vector.broadcast %cst_11 : f32 to vector<64x128xf32>
    %15 = arith.maximumf %13, %14 : vector<64x128xf32>
    %16 = arith.truncf %15 : vector<64x128xf32> to vector<64x128xbf16>
    %c0_12 = arith.constant 0 : index
    %c0_13 = arith.constant 0 : index
    %17 = vector.load %arg6[%c0_12, %c0_13] : memref<128x128xbf16, #tpu.memory_space<vmem>>, vector<128x128xbf16>
    %cst_14 = arith.constant dense<0.000000e+00> : vector<64x128xf32>
    %18 = tpu.matmul %16, %17, %cst_14 {dimension_numbers = #tpu.dot_dimension_numbers<[1], [0], [0], [1], [0, 0, 1, 1], [], []>} : vector<64x128xbf16>, vector<128x128xbf16>, vector<64x128xf32> -> vector<64x128xf32>
    %c0_15 = arith.constant 0 : index
    %c0_16 = arith.constant 0 : index
    %19 = vector.load %arg7[%c0_15, %c0_16] : memref<1x128xf32, #tpu.memory_space<vmem>>, vector<1x128xf32>
    %20 = vector.broadcast %19 : vector<1x128xf32> to vector<64x128xf32>
    %21 = arith.addf %18, %20 : vector<64x128xf32>
    %22 = arith.truncf %21 : vector<64x128xf32> to vector<64x128xbf16>
    %c0_17 = arith.constant 0 : index
    %c0_18 = arith.constant 0 : index
    %23 = vector.load %arg8[%c0_17, %c0_18] : memref<64x128xbf16, #tpu.memory_space<vmem>>, vector<64x128xbf16>
    tpu.vector_store %arg8[%c0_17, %c0_18], %22 {strides = array<i32>} : memref<64x128xbf16, #tpu.memory_space<vmem>>, vector<64x128xbf16>,
    %24 = arith.extf %22 : vector<64x128xbf16> to vector<64x128xf32>
    %cst_19 = arith.constant dense<0.000000e+00> : vector<128xf32>
    %25 = vector.multi_reduction <add>, %24, %cst_19 [0] : vector<64x128xf32> to vector<128xf32>
    %26 = vector.shape_cast %25 : vector<128xf32> to vector<1x128xf32>
    %27 = arith.mulf %24, %24 : vector<64x128xf32>
    %cst_20 = arith.constant dense<0.000000e+00> : vector<128xf32>
    %28 = vector.multi_reduction <add>, %27, %cst_20 [0] : vector<64x128xf32> to vector<128xf32>
    %29 = vector.shape_cast %28 : vector<128xf32> to vector<1x128xf32>
    %30 = tpu.iota {dimensions = array<i32: 0>} : vector<2x128xi32>
    %c0_i32 = arith.constant 0 : i32
    %31 = vector.broadcast %c0_i32 : i32 to vector<2x128xi32>
    %32 = arith.cmpi eq, %30, %31 : vector<2x128xi32>
    %33 = vector.shape_cast %26 : vector<1x128xf32> to vector<1x128xf32>
    %34 = vector.broadcast %33 : vector<1x128xf32> to vector<2x128xf32>
    %35 = vector.shape_cast %29 : vector<1x128xf32> to vector<1x128xf32>
    %36 = vector.broadcast %35 : vector<1x128xf32> to vector<2x128xf32>
    %37 = arith.select %32, %34, %36 : vector<2x128xi1>, vector<2x128xf32>
    %c0_21 = arith.constant 0 : index
    %c0_22 = arith.constant 0 : index
    %c0_23 = arith.constant 0 : index
    %38 = vector.load %arg9[%c0_21, %c0_22, %c0_23] : memref<1x2x128xf32, #tpu.memory_space<vmem>>, vector<1x2x128xf32>
    %39 = vector.shape_cast %38 : vector<1x2x128xf32> to vector<2x128xf32>
    %40 = vector.shape_cast %37 : vector<2x128xf32> to vector<1x2x128xf32>
    tpu.vector_store %arg9[%c0_21, %c0_22, %c0_23], %40 {strides = array<i32>} : memref<1x2x128xf32, #tpu.memory_space<vmem>>, vector<1x2x128xf32>,
    return
  }
  func.func @transform_0(%arg0: i32) -> (i32, i32) {
    %c0_i32 = arith.constant 0 : i32
    %c0_i32_0 = arith.constant 0 : i32
    return %arg0, %c0_i32 : i32, i32
  }
  func.func @transform_1(%arg0: i32) -> (i32, i32) {
    %c0_i32 = arith.constant 0 : i32
    %c0_i32_0 = arith.constant 0 : i32
    %c0_i32_1 = arith.constant 0 : i32
    return %c0_i32, %c0_i32_0 : i32, i32
  }
  func.func @transform_2(%arg0: i32) -> (i32, i32) {
    %c0_i32 = arith.constant 0 : i32
    %c0_i32_0 = arith.constant 0 : i32
    %c0_i32_1 = arith.constant 0 : i32
    return %c0_i32, %c0_i32_0 : i32, i32
  }
  func.func @transform_3(%arg0: i32) -> (i32, i32) {
    %c0_i32 = arith.constant 0 : i32
    %c0_i32_0 = arith.constant 0 : i32
    %c0_i32_1 = arith.constant 0 : i32
    return %c0_i32, %c0_i32_0 : i32, i32
  }
  func.func @transform_4(%arg0: i32) -> (i32, i32) {
    %c0_i32 = arith.constant 0 : i32
    %c0_i32_0 = arith.constant 0 : i32
    %c0_i32_1 = arith.constant 0 : i32
    return %c0_i32, %c0_i32_0 : i32, i32
  }
  func.func @transform_5(%arg0: i32) -> (i32, i32) {
    %c0_i32 = arith.constant 0 : i32
    %c0_i32_0 = arith.constant 0 : i32
    %c0_i32_1 = arith.constant 0 : i32
    return %c0_i32, %c0_i32_0 : i32, i32
  }
  func.func @transform_6(%arg0: i32) -> (i32, i32) {
    %c0_i32 = arith.constant 0 : i32
    %c0_i32_0 = arith.constant 0 : i32
    %c0_i32_1 = arith.constant 0 : i32
    return %c0_i32, %c0_i32_0 : i32, i32
  }
  func.func @transform_7(%arg0: i32) -> (i32, i32) {
    %c0_i32 = arith.constant 0 : i32
    %c0_i32_0 = arith.constant 0 : i32
    return %arg0, %c0_i32 : i32, i32
  }
  func.func @transform_8(%arg0: i32) -> (i32, i32, i32) {
    %c0_i32 = arith.constant 0 : i32
    %c0_i32_0 = arith.constant 0 : i32
    %c0_i32_1 = arith.constant 0 : i32
    return %arg0, %c0_i32, %c0_i32_0 : i32, i32, i32
  }
}

module attributes {stable_mosaic.version = 11 : i64} {
  func.func @kernel(%arg0: i32, %arg1: memref<64x128xbf16, #tpu.memory_space<vmem>>, %arg2: memref<1x128xf32, #tpu.memory_space<vmem>>, %arg3: memref<1x128xf32, #tpu.memory_space<vmem>>, %arg4: memref<128x128xbf16, #tpu.memory_space<vmem>>, %arg5: memref<1x128xf32, #tpu.memory_space<vmem>>, %arg6: memref<64x128xbf16, #tpu.memory_space<vmem>>, %arg7: memref<1x2x128xf32, #tpu.memory_space<vmem>>) attributes {dimension_semantics = [#tpu.dimension_semantics<parallel>], iteration_bounds = array<i64: 1>, scalar_prefetch = 0 : i64, scratch_operands = 0 : i64, tpu.core_type = #tpu.core_type<tc>, window_params = [{transform_indices = @transform_0, window_bounds = array<i64: 64, 128>}, {pipeline_mode = #tpu.pipeline_mode<synchronous>, transform_indices = @transform_1, window_bounds = array<i64: 1, 128>}, {pipeline_mode = #tpu.pipeline_mode<synchronous>, transform_indices = @transform_2, window_bounds = array<i64: 1, 128>}, {pipeline_mode = #tpu.pipeline_mode<synchronous>, transform_indices = @transform_3, window_bounds = array<i64: 128, 128>}, {pipeline_mode = #tpu.pipeline_mode<synchronous>, transform_indices = @transform_4, window_bounds = array<i64: 1, 128>}, {transform_indices = @transform_5, window_bounds = array<i64: 64, 128>}, {transform_indices = @transform_6, window_bounds = array<i64: 1, 2, 128>}]} {
    %c0 = arith.constant 0 : index
    %c0_0 = arith.constant 0 : index
    %0 = vector.load %arg1[%c0, %c0_0] : memref<64x128xbf16, #tpu.memory_space<vmem>>, vector<64x128xbf16>
    %1 = arith.extf %0 : vector<64x128xbf16> to vector<64x128xf32>
    %c0_1 = arith.constant 0 : index
    %c0_2 = arith.constant 0 : index
    %2 = vector.load %arg2[%c0_1, %c0_2] : memref<1x128xf32, #tpu.memory_space<vmem>>, vector<1x128xf32>
    %3 = vector.broadcast %2 : vector<1x128xf32> to vector<64x128xf32>
    %4 = arith.mulf %1, %3 : vector<64x128xf32>
    %c0_3 = arith.constant 0 : index
    %c0_4 = arith.constant 0 : index
    %5 = vector.load %arg3[%c0_3, %c0_4] : memref<1x128xf32, #tpu.memory_space<vmem>>, vector<1x128xf32>
    %6 = vector.broadcast %5 : vector<1x128xf32> to vector<64x128xf32>
    %7 = arith.addf %4, %6 : vector<64x128xf32>
    %cst = arith.constant 0.000000e+00 : f32
    %8 = vector.broadcast %cst : f32 to vector<64x128xf32>
    %9 = arith.maximumf %7, %8 : vector<64x128xf32>
    %10 = arith.truncf %9 : vector<64x128xf32> to vector<64x128xbf16>
    %c0_5 = arith.constant 0 : index
    %c0_6 = arith.constant 0 : index
    %11 = vector.load %arg4[%c0_5, %c0_6] : memref<128x128xbf16, #tpu.memory_space<vmem>>, vector<128x128xbf16>
    %cst_7 = arith.constant dense<0.000000e+00> : vector<64x128xf32>
    %12 = tpu.matmul %10, %11, %cst_7 {dimension_numbers = #tpu.dot_dimension_numbers<[1], [0], [0], [1], [0, 0, 1, 1], [], []>} : vector<64x128xbf16>, vector<128x128xbf16>, vector<64x128xf32> -> vector<64x128xf32>
    %c0_8 = arith.constant 0 : index
    %c0_9 = arith.constant 0 : index
    %13 = vector.load %arg5[%c0_8, %c0_9] : memref<1x128xf32, #tpu.memory_space<vmem>>, vector<1x128xf32>
    %14 = vector.broadcast %13 : vector<1x128xf32> to vector<64x128xf32>
    %15 = arith.addf %12, %14 : vector<64x128xf32>
    %16 = arith.truncf %15 : vector<64x128xf32> to vector<64x128xbf16>
    %c0_10 = arith.constant 0 : index
    %c0_11 = arith.constant 0 : index
    %17 = vector.load %arg6[%c0_10, %c0_11] : memref<64x128xbf16, #tpu.memory_space<vmem>>, vector<64x128xbf16>
    tpu.vector_store %arg6[%c0_10, %c0_11], %16 {strides = array<i32>} : memref<64x128xbf16, #tpu.memory_space<vmem>>, vector<64x128xbf16>,
    %18 = arith.extf %16 : vector<64x128xbf16> to vector<64x128xf32>
    %cst_12 = arith.constant dense<0.000000e+00> : vector<128xf32>
    %19 = vector.multi_reduction <add>, %18, %cst_12 [0] : vector<64x128xf32> to vector<128xf32>
    %20 = vector.shape_cast %19 : vector<128xf32> to vector<1x128xf32>
    %21 = arith.mulf %18, %18 : vector<64x128xf32>
    %cst_13 = arith.constant dense<0.000000e+00> : vector<128xf32>
    %22 = vector.multi_reduction <add>, %21, %cst_13 [0] : vector<64x128xf32> to vector<128xf32>
    %23 = vector.shape_cast %22 : vector<128xf32> to vector<1x128xf32>
    %24 = tpu.iota {dimensions = array<i32: 0>} : vector<2x128xi32>
    %c0_i32 = arith.constant 0 : i32
    %25 = vector.broadcast %c0_i32 : i32 to vector<2x128xi32>
    %26 = arith.cmpi eq, %24, %25 : vector<2x128xi32>
    %27 = vector.shape_cast %20 : vector<1x128xf32> to vector<1x128xf32>
    %28 = vector.broadcast %27 : vector<1x128xf32> to vector<2x128xf32>
    %29 = vector.shape_cast %23 : vector<1x128xf32> to vector<1x128xf32>
    %30 = vector.broadcast %29 : vector<1x128xf32> to vector<2x128xf32>
    %31 = arith.select %26, %28, %30 : vector<2x128xi1>, vector<2x128xf32>
    %c0_14 = arith.constant 0 : index
    %c0_15 = arith.constant 0 : index
    %c0_16 = arith.constant 0 : index
    %32 = vector.load %arg7[%c0_14, %c0_15, %c0_16] : memref<1x2x128xf32, #tpu.memory_space<vmem>>, vector<1x2x128xf32>
    %33 = vector.shape_cast %32 : vector<1x2x128xf32> to vector<2x128xf32>
    %34 = vector.shape_cast %31 : vector<2x128xf32> to vector<1x2x128xf32>
    tpu.vector_store %arg7[%c0_14, %c0_15, %c0_16], %34 {strides = array<i32>} : memref<1x2x128xf32, #tpu.memory_space<vmem>>, vector<1x2x128xf32>,
    return
  }
  func.func @transform_0(%arg0: i32) -> (i32, i32) {
    %c0_i32 = arith.constant 0 : i32
    %c0_i32_0 = arith.constant 0 : i32
    return %arg0, %c0_i32 : i32, i32
  }
  func.func @transform_1(%arg0: i32) -> (i32, i32) {
    %c0_i32 = arith.constant 0 : i32
    %c0_i32_0 = arith.constant 0 : i32
    %c0_i32_1 = arith.constant 0 : i32
    return %c0_i32, %c0_i32_0 : i32, i32
  }
  func.func @transform_2(%arg0: i32) -> (i32, i32) {
    %c0_i32 = arith.constant 0 : i32
    %c0_i32_0 = arith.constant 0 : i32
    %c0_i32_1 = arith.constant 0 : i32
    return %c0_i32, %c0_i32_0 : i32, i32
  }
  func.func @transform_3(%arg0: i32) -> (i32, i32) {
    %c0_i32 = arith.constant 0 : i32
    %c0_i32_0 = arith.constant 0 : i32
    %c0_i32_1 = arith.constant 0 : i32
    return %c0_i32, %c0_i32_0 : i32, i32
  }
  func.func @transform_4(%arg0: i32) -> (i32, i32) {
    %c0_i32 = arith.constant 0 : i32
    %c0_i32_0 = arith.constant 0 : i32
    %c0_i32_1 = arith.constant 0 : i32
    return %c0_i32, %c0_i32_0 : i32, i32
  }
  func.func @transform_5(%arg0: i32) -> (i32, i32) {
    %c0_i32 = arith.constant 0 : i32
    %c0_i32_0 = arith.constant 0 : i32
    return %arg0, %c0_i32 : i32, i32
  }
  func.func @transform_6(%arg0: i32) -> (i32, i32, i32) {
    %c0_i32 = arith.constant 0 : i32
    %c0_i32_0 = arith.constant 0 : i32
    %c0_i32_1 = arith.constant 0 : i32
    return %arg0, %c0_i32, %c0_i32_0 : i32, i32, i32
  }
}

module attributes {stable_mosaic.version = 11 : i64} {
  func.func @kernel(%arg0: i32, %arg1: memref<64x128xbf16, #tpu.memory_space<vmem>>, %arg2: memref<1x128xf32, #tpu.memory_space<vmem>>, %arg3: memref<1x128xf32, #tpu.memory_space<vmem>>, %arg4: memref<128x128xbf16, #tpu.memory_space<vmem>>, %arg5: memref<1x128xf32, #tpu.memory_space<vmem>>, %arg6: memref<128x4xbf16, #tpu.memory_space<vmem>>, %arg7: memref<1x4xf32, #tpu.memory_space<vmem>>, %arg8: memref<64x4xf32, #tpu.memory_space<vmem>>) attributes {dimension_semantics = [#tpu.dimension_semantics<parallel>], iteration_bounds = array<i64: 1>, scalar_prefetch = 0 : i64, scratch_operands = 0 : i64, tpu.core_type = #tpu.core_type<tc>, window_params = [{transform_indices = @transform_0, window_bounds = array<i64: 64, 128>}, {pipeline_mode = #tpu.pipeline_mode<synchronous>, transform_indices = @transform_1, window_bounds = array<i64: 1, 128>}, {pipeline_mode = #tpu.pipeline_mode<synchronous>, transform_indices = @transform_2, window_bounds = array<i64: 1, 128>}, {pipeline_mode = #tpu.pipeline_mode<synchronous>, transform_indices = @transform_3, window_bounds = array<i64: 128, 128>}, {pipeline_mode = #tpu.pipeline_mode<synchronous>, transform_indices = @transform_4, window_bounds = array<i64: 1, 128>}, {pipeline_mode = #tpu.pipeline_mode<synchronous>, transform_indices = @transform_5, window_bounds = array<i64: 128, 4>}, {pipeline_mode = #tpu.pipeline_mode<synchronous>, transform_indices = @transform_6, window_bounds = array<i64: 1, 4>}, {transform_indices = @transform_7, window_bounds = array<i64: 64, 4>}]} {
    %c0 = arith.constant 0 : index
    %c0_0 = arith.constant 0 : index
    %0 = vector.load %arg1[%c0, %c0_0] : memref<64x128xbf16, #tpu.memory_space<vmem>>, vector<64x128xbf16>
    %1 = arith.extf %0 : vector<64x128xbf16> to vector<64x128xf32>
    %c0_1 = arith.constant 0 : index
    %c0_2 = arith.constant 0 : index
    %2 = vector.load %arg2[%c0_1, %c0_2] : memref<1x128xf32, #tpu.memory_space<vmem>>, vector<1x128xf32>
    %3 = vector.broadcast %2 : vector<1x128xf32> to vector<64x128xf32>
    %4 = arith.mulf %1, %3 : vector<64x128xf32>
    %c0_3 = arith.constant 0 : index
    %c0_4 = arith.constant 0 : index
    %5 = vector.load %arg3[%c0_3, %c0_4] : memref<1x128xf32, #tpu.memory_space<vmem>>, vector<1x128xf32>
    %6 = vector.broadcast %5 : vector<1x128xf32> to vector<64x128xf32>
    %7 = arith.addf %4, %6 : vector<64x128xf32>
    %8 = arith.truncf %7 : vector<64x128xf32> to vector<64x128xbf16>
    %c0_5 = arith.constant 0 : index
    %c0_6 = arith.constant 0 : index
    %9 = vector.load %arg4[%c0_5, %c0_6] : memref<128x128xbf16, #tpu.memory_space<vmem>>, vector<128x128xbf16>
    %cst = arith.constant dense<0.000000e+00> : vector<64x128xf32>
    %10 = tpu.matmul %8, %9, %cst {dimension_numbers = #tpu.dot_dimension_numbers<[1], [0], [0], [1], [0, 0, 1, 1], [], []>} : vector<64x128xbf16>, vector<128x128xbf16>, vector<64x128xf32> -> vector<64x128xf32>
    %c0_7 = arith.constant 0 : index
    %c0_8 = arith.constant 0 : index
    %11 = vector.load %arg5[%c0_7, %c0_8] : memref<1x128xf32, #tpu.memory_space<vmem>>, vector<1x128xf32>
    %12 = vector.broadcast %11 : vector<1x128xf32> to vector<64x128xf32>
    %13 = arith.addf %10, %12 : vector<64x128xf32>
    %cst_9 = arith.constant 0.000000e+00 : f32
    %14 = vector.broadcast %cst_9 : f32 to vector<64x128xf32>
    %15 = arith.maximumf %13, %14 : vector<64x128xf32>
    %16 = arith.truncf %15 : vector<64x128xf32> to vector<64x128xbf16>
    %c0_10 = arith.constant 0 : index
    %c0_11 = arith.constant 0 : index
    %17 = vector.load %arg6[%c0_10, %c0_11] : memref<128x4xbf16, #tpu.memory_space<vmem>>, vector<128x4xbf16>
    %cst_12 = arith.constant dense<0.000000e+00> : vector<64x4xf32>
    %18 = tpu.matmul %16, %17, %cst_12 {dimension_numbers = #tpu.dot_dimension_numbers<[1], [0], [0], [1], [0, 0, 1, 1], [], []>} : vector<64x128xbf16>, vector<128x4xbf16>, vector<64x4xf32> -> vector<64x4xf32>
    %c0_13 = arith.constant 0 : index
    %c0_14 = arith.constant 0 : index
    %19 = vector.load %arg7[%c0_13, %c0_14] : memref<1x4xf32, #tpu.memory_space<vmem>>, vector<1x4xf32>
    %20 = vector.broadcast %19 : vector<1x4xf32> to vector<64x4xf32>
    %21 = arith.addf %18, %20 : vector<64x4xf32>
    %c0_15 = arith.constant 0 : index
    %c0_16 = arith.constant 0 : index
    %22 = vector.load %arg8[%c0_15, %c0_16] : memref<64x4xf32, #tpu.memory_space<vmem>>, vector<64x4xf32>
    tpu.vector_store %arg8[%c0_15, %c0_16], %21 {strides = array<i32>} : memref<64x4xf32, #tpu.memory_space<vmem>>, vector<64x4xf32>,
    return
  }
  func.func @transform_0(%arg0: i32) -> (i32, i32) {
    %c0_i32 = arith.constant 0 : i32
    %c0_i32_0 = arith.constant 0 : i32
    return %arg0, %c0_i32 : i32, i32
  }
  func.func @transform_1(%arg0: i32) -> (i32, i32) {
    %c0_i32 = arith.constant 0 : i32
    %c0_i32_0 = arith.constant 0 : i32
    %c0_i32_1 = arith.constant 0 : i32
    return %c0_i32, %c0_i32_0 : i32, i32
  }
  func.func @transform_2(%arg0: i32) -> (i32, i32) {
    %c0_i32 = arith.constant 0 : i32
    %c0_i32_0 = arith.constant 0 : i32
    %c0_i32_1 = arith.constant 0 : i32
    return %c0_i32, %c0_i32_0 : i32, i32
  }
  func.func @transform_3(%arg0: i32) -> (i32, i32) {
    %c0_i32 = arith.constant 0 : i32
    %c0_i32_0 = arith.constant 0 : i32
    %c0_i32_1 = arith.constant 0 : i32
    return %c0_i32, %c0_i32_0 : i32, i32
  }
  func.func @transform_4(%arg0: i32) -> (i32, i32) {
    %c0_i32 = arith.constant 0 : i32
    %c0_i32_0 = arith.constant 0 : i32
    %c0_i32_1 = arith.constant 0 : i32
    return %c0_i32, %c0_i32_0 : i32, i32
  }
  func.func @transform_5(%arg0: i32) -> (i32, i32) {
    %c0_i32 = arith.constant 0 : i32
    %c0_i32_0 = arith.constant 0 : i32
    %c0_i32_1 = arith.constant 0 : i32
    return %c0_i32, %c0_i32_0 : i32, i32
  }
  func.func @transform_6(%arg0: i32) -> (i32, i32) {
    %c0_i32 = arith.constant 0 : i32
    %c0_i32_0 = arith.constant 0 : i32
    %c0_i32_1 = arith.constant 0 : i32
    return %c0_i32, %c0_i32_0 : i32, i32
  }
  func.func @transform_7(%arg0: i32) -> (i32, i32) {
    %c0_i32 = arith.constant 0 : i32
    %c0_i32_0 = arith.constant 0 : i32
    return %arg0, %c0_i32 : i32, i32
  }
}

</mosaic_0001>

<bundles_post_ra>
// kernel: net2d_forward.5
= control target key start
LH: loop header
LB: loop body
LE: loop exit
PB: predicated region body
PF: predicated region fallthrough
CT: control target
= control target key end

     0   :  { %s963_s1 = inlined_call_operand.vmem [shape: bf16[128,128], index: 1, kind: input, shape index: {}]   ;;  %s964_s0 = inlined_call_operand.vmem [shape: bf16[64,128], index: 0, kind: input, shape index: {}]   ;;  %s965_s3 = inlined_call_operand.vmem [shape: bf16[128,128], index: 3, kind: input, shape index: {}]   ;;  %s966_s5 = inlined_call_operand.vmem [shape: bf16[128,128], index: 5, kind: input, shape index: {}]   ;;  %s967_s2 = inlined_call_operand.vmem [shape: f32[1,128], index: 2, kind: input, shape index: {}]   ;;  %s968_s4 = inlined_call_operand.vmem [shape: f32[1,128], index: 4, kind: input, shape index: {}]   ;;  %s969_s6 = inlined_call_operand.vmem [shape: f32[1,128], index: 6, kind: input, shape index: {}]   ;;  %s970_s7 = inlined_call_operand.vmem [shape: bf16[64,128], index: 7, kind: output, shape index: {0}]   ;;  %s971_s8 = inlined_call_operand.vmem [shape: f32[1,2,128], index: 8, kind: output, shape index: {1}]  }
   0x1   :  { %v782_v0 = vld [vmem:[%s963_s1] sm:$0xff]   ;;  %v783_v1 = vld [vmem:[%s963_s1 + $0x8] sm:$0xff]   ;;  %v784_v2 = vld [vmem:[%s963_s1 + $0x10] sm:$0xff]  }
   0x2   :  { %694 = vmatprep.subr.bf16.mxu0 %v782_v0  ;;  %v785_v3 = vld [vmem:[%s963_s1 + $0x18] sm:$0xff]   ;;  %v790_v4 = vld [vmem:[%s964_s0] sm:$0xff]   ;;  %v795_v7 = vld [vmem:[%s965_s3 + $0x8] sm:$0xff]  }
   0x3   :  { %695 = vmatpush3.bf16.msra.mxu0 %v782_v0  ;;  %710 = vmatprep.mubr.bf16.mxu0 %v790_v4  ;;  %v786_v5 = vld [vmem:[%s963_s1 + $0x20] sm:$0xff]   ;;  %v787_v8 = vld [vmem:[%s963_s1 + $0x28] sm:$0xff]   ;;  %v796_v9 = vld [vmem:[%s965_s3 + $0x10] sm:$0xff]  }
   0x4   :  { %696 = vmatprep.subr.bf16.mxu0 %v783_v1  ;;  %v794_v6 = vld [vmem:[%s965_s3] sm:$0xff]   ;;  %v788_v10 = vld [vmem:[%s963_s1 + $0x30] sm:$0xff]   ;;  %v797_v11 = vld [vmem:[%s965_s3 + $0x18] sm:$0xff]  }
   0x5   :  { %718 = vmatprep.subr.bf16.mxu1 %v794_v6  ;;  %v789_v12 = vld [vmem:[%s963_s1 + $0x38] sm:$0xff]   ;;  %v798_v13 = vld [vmem:[%s965_s3 + $0x20] sm:$0xff]   ;;  %v799_v14 = vld [vmem:[%s965_s3 + $0x28] sm:$0xff]  }
   0x6   :  { %719 = vmatpush3.bf16.msra.mxu1 %v794_v6  ;;  %v791_v15 = vld [vmem:[%s964_s0 + $0x8] sm:$0xff]   ;;  %v792_v16 = vld [vmem:[%s964_s0 + $0x10] sm:$0xff]   ;;  %v793_v17 = vld [vmem:[%s964_s0 + $0x18] sm:$0xff]  }
   0x7   :  { %697 = vmatpush3.bf16.msra.mxu0 %v783_v1  ;;  %720 = vmatprep.subr.bf16.mxu1 %v795_v7  ;;  %v800_v18 = vld [vmem:[%s965_s3 + $0x30] sm:$0xff]   ;;  %v801_v19 = vld [vmem:[%s965_s3 + $0x38] sm:$0xff]   ;;  %v802_v20 = vld [vmem:[%s966_s5] sm:$0xff]  }
   0x8   :  { %698 = vmatprep.subr.bf16.mxu0 %v784_v2  ;;  %v803_v21 = vld [vmem:[%s966_s5 + $0x8] sm:$0xff]   ;;  %v804_v22 = vld [vmem:[%s966_s5 + $0x10] sm:$0xff]   ;;  %v805_v23 = vld [vmem:[%s966_s5 + $0x18] sm:$0xff]  }
   0x9   :  { %v806_v24 = vld [vmem:[%s966_s5 + $0x20] sm:$0xff]   ;;  %v807_v25 = vld [vmem:[%s966_s5 + $0x28] sm:$0xff]   ;;  %v808_v55 = vld [vmem:[%s966_s5 + $0x30] sm:$0xff]  }
   0xa   :  { %721 = vmatpush3.bf16.msra.mxu1 %v795_v7  ;;  %v588_v26 = vld [vmem:[%s967_s2] ss:$0 sm:$0xff]  ;;  %v809_v56 = vld [vmem:[%s966_s5 + $0x38] sm:$0xff]  }
   0xb   :  { %699 = vmatpush3.bf16.msra.mxu0 %v784_v2  ;;  %722 = vmatprep.subr.bf16.mxu1 %v796_v9  ;;  %v601_v57 = vld [vmem:[%s968_s4] ss:$0 sm:$0xff] }
   0xc   :  { %700 = vmatprep.subr.bf16.mxu0 %v785_v3 }
   0xe   :  { %723 = vmatpush3.bf16.msra.mxu1 %v796_v9 }
   0xf   :  { %701 = vmatpush3.bf16.msra.mxu0 %v785_v3  ;;  %724 = vmatprep.subr.bf16.mxu1 %v797_v11 }
  0x10   :  { %702 = vmatprep.subr.bf16.mxu0 %v786_v5 }
  0x12   :  { %725 = vmatpush3.bf16.msra.mxu1 %v797_v11 }
  0x13   :  { %703 = vmatpush3.bf16.msra.mxu0 %v786_v5  ;;  %726 = vmatprep.subr.bf16.mxu1 %v798_v13 }
  0x14   :  { %704 = vmatprep.subr.bf16.mxu0 %v787_v8 }
  0x16   :  { %727 = vmatpush3.bf16.msra.mxu1 %v798_v13 }
  0x17   :  { %705 = vmatpush3.bf16.msra.mxu0 %v787_v8  ;;  %728 = vmatprep.subr.bf16.mxu1 %v799_v14 }
  0x18   :  { %706 = vmatprep.subr.bf16.mxu0 %v788_v10 }
  0x1a   :  { %729 = vmatpush3.bf16.msra.mxu1 %v799_v14 }
  0x1b   :  { %707 = vmatpush3.bf16.msra.mxu0 %v788_v10  ;;  %730 = vmatprep.subr.bf16.mxu1 %v800_v18 }
  0x1c   :  { %708 = vmatprep.subr.bf16.mxu0 %v789_v12 }
  0x1e   :  { %731 = vmatpush3.bf16.msra.mxu1 %v800_v18 }
  0x1f   :  { %709 = vmatpush3.bf16.msra.mxu0 %v789_v12  ;;  %732 = vmatprep.subr.bf16.mxu1 %v801_v19 }
  0x20   :  { %742 = vmatprep.subr.bf16.mxu0 %v802_v20 }
  0x22   :  { %711 = vmatmul.mubr.bf16.vlgmr.msra.gmra.mrb[0].mxu0 %v791_v15  ;;  %733 = vmatpush3.bf16.msra.mxu1 %v801_v19 }
  0x23   :  { %714 = vmatprep.mubr.bf16.mxu0 %v792_v16  ;;  %766 = vmatprep.subr.bf16.mxu1 %v802_v20 }
  0x24   :  { %743 = vmatpush3.bf16.msra.mxu0 %v802_v20 }
  0x25   :  { %744 = vmatprep.subr.bf16.mxu0 %v803_v21 }
  0x28   :  { %745 = vmatpush3.bf16.msra.mxu0 %v803_v21 }
  0x29   :  { %746 = vmatprep.subr.bf16.mxu0 %v804_v22 }
  0x2a   :  { %715 = vmatmul.mubr.bf16.gmra.mrb[4].mxu0 %v793_v17 }
  0x2c   :  { %747 = vmatpush3.bf16.msra.mxu0 %v804_v22 }
  0x2d   :  { %748 = vmatprep.subr.bf16.mxu0 %v805_v23 }
  0x30   :  { %749 = vmatpush3.bf16.msra.mxu0 %v805_v23 }
  0x31   :  { %750 = vmatprep.subr.bf16.mxu0 %v806_v24 }
  0x34   :  { %751 = vmatpush3.bf16.msra.mxu0 %v806_v24 }
  0x35   :  { %752 = vmatprep.subr.bf16.mxu0 %v807_v25 }
  0x38   :  { %753 = vmatpush3.bf16.msra.mxu0 %v807_v25 }
  0x39   :  { %754 = vmatprep.subr.bf16.mxu0 %v808_v55 }
  0x3c   :  { %755 = vmatpush3.bf16.msra.mxu0 %v808_v55 }
  0x3d   :  { %756 = vmatprep.subr.bf16.mxu0 %v809_v56 }
  0x40   :  { %757 = vmatpush3.bf16.msra.mxu0 %v809_v56 }
  0xf5   :  { %v712_v27 = vpop.f32.mrb[0].mxu0 }
  0xf6   :  { %v175_v28 = vadd.f32 %v712_v27, %v588_v26  ;;  %v166_v29 = vpop.f32.mrb[1].mxu0 }
  0xf7   :  { %v167_v30 = vadd.f32 %v588_v26, %v166_v29  ;;  %v713_v31 = vpop.f32.mrb[2].mxu0 }
  0xf8   :  { %v178_v32 = vadd.f32 %v713_v31, %v588_v26  ;;  %v169_v33 = vpop.f32.mrb[3].mxu0  ;;  %v199_v35 = vmax.f32 %v175_v28, 0.0 }
  0xf9   :  { %v170_v34 = vadd.f32 %v588_v26, %v169_v33  ;;  %v197_v37 = vmax.f32 %v167_v30, 0.0 }
  0xfa   :  { %v200_v36 = vmax.f32 %v178_v32, 0.0 }
  0xfb   :  { %v198_v38 = vmax.f32 %v170_v34, 0.0 }
  0xfc   :  { %v206_v39 = vpack.c.bf16 %v200_v36, %v199_v35 }
  0xfd   :  { %v716_v40 = vpop.f32.mrb[4].mxu0  ;;  %v205_v41 = vpack.c.bf16 %v198_v38, %v197_v37 }
  0xfe   :  { %v191_v42 = vadd.f32 %v716_v40, %v588_v26  ;;  %v182_v43 = vpop.f32.mrb[5].mxu0 }
  0xff   :  { %v183_v44 = vadd.f32 %v588_v26, %v182_v43  ;;  %v717_v45 = vpop.f32.mrb[6].mxu0  ;;  %734 = vmatprep.mubr.bf16.mxu1 %v205_v41 }
 0x100   :  { %v194_v46 = vadd.f32 %v717_v45, %v588_v26  ;;  %v185_v47 = vpop.f32.mrb[7].mxu0  ;;  %735 = vmatmul.mubr.bf16.vlgmr.msra.gmra.mrb[0].mxu1 %v206_v39  ;;  %v203_v49 = vmax.f32 %v191_v42, 0.0 }
 0x101   :  { %v186_v48 = vadd.f32 %v588_v26, %v185_v47  ;;  %774 = vmatpush3.bf16.msra.mxu1 %v802_v20  ;;  %v201_v51 = vmax.f32 %v183_v44, 0.0 }
 0x102   :  { %v204_v50 = vmax.f32 %v194_v46, 0.0  ;;  %767 = vmatprep.subr.bf16.mxu1 %v803_v21 }
 0x103   :  { %v202_v52 = vmax.f32 %v186_v48, 0.0 }
 0x104   :  { %v208_v53 = vpack.c.bf16 %v204_v50, %v203_v49 }
 0x105   :  { %v207_v54 = vpack.c.bf16 %v202_v52, %v201_v51  ;;  %775 = vmatpush3.bf16.msra.mxu1 %v803_v21 }
 0x106   :  { %768 = vmatprep.subr.bf16.mxu1 %v804_v22 }
 0x107   :  { %738 = vmatprep.mubr.bf16.mxu1 %v207_v54 }
 0x108   :  { %739 = vmatmul.mubr.bf16.gmra.mrb[4].mxu1 %v208_v53 }
 0x109   :  { %776 = vmatpush3.bf16.msra.mxu1 %v804_v22 }
 0x10a   :  { %769 = vmatprep.subr.bf16.mxu1 %v805_v23 }
 0x10d   :  { %777 = vmatpush3.bf16.msra.mxu1 %v805_v23  ;;  %v610_v23 = vld [vmem:[%s969_s6] ss:$0 sm:$0xff] }
 0x10e   :  { %770 = vmatprep.subr.bf16.mxu1 %v806_v24 }
 0x111   :  { %778 = vmatpush3.bf16.msra.mxu1 %v806_v24 }
 0x112   :  { %771 = vmatprep.subr.bf16.mxu1 %v807_v25 }
 0x115   :  { %779 = vmatpush3.bf16.msra.mxu1 %v807_v25 }
 0x116   :  { %772 = vmatprep.subr.bf16.mxu1 %v808_v55 }
 0x119   :  { %780 = vmatpush3.bf16.msra.mxu1 %v808_v55 }
 0x11a   :  { %773 = vmatprep.subr.bf16.mxu1 %v809_v56 }
 0x11d   :  { %781 = vmatpush3.bf16.msra.mxu1 %v809_v56 }
 0x1d3   :  { %v736_v58 = vpop.f32.mrb[0].mxu1 }
 0x1d4   :  { %v323_v59 = vadd.f32 %v736_v58, %v601_v57  ;;  %v314_v60 = vpop.f32.mrb[1].mxu1 }
 0x1d5   :  { %v315_v61 = vadd.f32 %v601_v57, %v314_v60  ;;  %v737_v62 = vpop.f32.mrb[2].mxu1 }
 0x1d6   :  { %v326_v63 = vadd.f32 %v737_v62, %v601_v57  ;;  %v317_v0 = vpop.f32.mrb[3].mxu1  ;;  %v347_v2 = vmax.f32 %v323_v59, 0.0 }
 0x1d7   :  { %v318_v1 = vadd.f32 %v601_v57, %v317_v0  ;;  %v345_v4 = vmax.f32 %v315_v61, 0.0 }
 0x1d8   :  { %v348_v3 = vmax.f32 %v326_v63, 0.0 }
 0x1d9   :  { %v346_v5 = vmax.f32 %v318_v1, 0.0 }
 0x1da   :  { %v354_v6 = vpack.c.bf16 %v348_v3, %v347_v2 }
 0x1db   :  { %v353_v7 = vpack.c.bf16 %v346_v5, %v345_v4  ;;  %v740_v8 = vpop.f32.mrb[4].mxu1 }
 0x1dc   :  { %v339_v9 = vadd.f32 %v740_v8, %v601_v57  ;;  %v330_v10 = vpop.f32.mrb[5].mxu1 }
 0x1dd   :  { %v331_v11 = vadd.f32 %v601_v57, %v330_v10  ;;  %v741_v12 = vpop.f32.mrb[6].mxu1  ;;  %758 = vmatprep.mubr.bf16.mxu0 %v353_v7 }
 0x1de   :  { %v342_v13 = vadd.f32 %v741_v12, %v601_v57  ;;  %v333_v14 = vpop.f32.mrb[7].mxu1  ;;  %759 = vmatmul.mubr.bf16.vlgmr.msra.gmra.mrb[8].mxu0 %v354_v6  ;;  %v351_v16 = vmax.f32 %v339_v9, 0.0  ;;  %v575_v12 = vlaneseq }
 0x1df   :  { %v334_v15 = vadd.f32 %v601_v57, %v333_v14  ;;  %v349_v18 = vmax.f32 %v331_v11, 0.0 }
 0x1e0   :  { %v352_v17 = vmax.f32 %v342_v13, 0.0 }
 0x1e1   :  { %v350_v19 = vmax.f32 %v334_v15, 0.0 }
 0x1e2   :  { %v356_v20 = vpack.c.bf16 %v352_v17, %v351_v16  ;;  %v576_v17 = vshrl.u32 %v575_v12, 7 }
 0x1e3   :  { %v355_v21 = vpack.c.bf16 %v350_v19, %v349_v18 }
 0x1e4   :  { %vm577_vm0 = vcmp.eq.s32.totalorder %v576_v17, 0 }
 0x1e5   :  { %762 = vmatprep.mubr.bf16.mxu1 %v355_v21 }
 0x1e6   :  { %763 = vmatmul.mubr.bf16.vlgmr.msra.gmra.mrb[8].mxu1 %v356_v20 }
 0x2b1   :  { %v760_v22 = vpop.f32.mrb[8].mxu0 }
 0x2b2   :  { %v462_v24 = vpop.f32.mrb[9].mxu0  ;;  %v471_v26 = vadd.f32 %v760_v22, %v610_v23 }
 0x2b3   :  { %v761_v25 = vpop.f32.mrb[10].mxu0  ;;  %v463_v29 = vadd.f32 %v610_v23, %v462_v24 }
 0x2b4   :  { %v474_v27 = vadd.f32 %v761_v25, %v610_v23  ;;  %v465_v28 = vpop.f32.mrb[11].mxu0 }
 0x2b5   :  { %v466_v30 = vadd.f32 %v610_v23, %v465_v28 }
 0x2b6   :  { %v494_v31 = vpack.c.bf16 %v474_v27, %v471_v26 }
 0x2b7   :  { %v493_v32 = vpack.c.bf16 %v466_v30, %v463_v29 }
 0x2b8   :  { %655 = vst [vmem:[%s970_s7 + $0x8] sm:$0xff] %v494_v31   ;;  %v535_v33 = vunpack.c.l.bf16 %v494_v31  ;;  %v536_v38 = vunpack.c.h.bf16 %v494_v31 }
 0x2b9   :  { %639 = vst [vmem:[%s970_s7] sm:$0xff] %v493_v32   ;;  %v533_v34 = vunpack.c.l.bf16 %v493_v32  ;;  %v534_v35 = vunpack.c.h.bf16 %v493_v32  ;;  %v764_v36 = vpop.f32.mrb[8].mxu1 }
 0x2ba   :  { %v478_v37 = vpop.f32.mrb[9].mxu1  ;;  %v556_v43 = vmul.f32 %v535_v33, %v535_v33  ;;  %v487_v44 = vadd.f32 %v764_v36, %v610_v23  ;;  %v557_v52 = vmul.f32 %v536_v38, %v536_v38 }
 0x2bb   :  { %v541_v39 = vadd.f32 %v534_v35, %v533_v34  ;;  %v554_v40 = vmul.f32 %v533_v34, %v533_v34  ;;  %v555_v41 = vmul.f32 %v534_v35, %v534_v35  ;;  %v765_v42 = vpop.f32.mrb[10].mxu1  ;;  %v479_v49 = vadd.f32 %v610_v23, %v478_v37 }
 0x2bc   :  { %v490_v45 = vadd.f32 %v765_v42, %v610_v23  ;;  %v481_v46 = vpop.f32.mrb[11].mxu1 }
 0x2bd   :  { %v542_v47 = vadd.f32 %v541_v39, %v535_v33  ;;  %v562_v48 = vadd.f32 %v555_v41, %v554_v40  ;;  %v482_v50 = vadd.f32 %v610_v23, %v481_v46 }
 0x2be   :  { %v496_v51 = vpack.c.bf16 %v490_v45, %v487_v44 }
 0x2bf   :  { %v563_v53 = vadd.f32 %v562_v48, %v556_v43  ;;  %v495_v54 = vpack.c.bf16 %v482_v50, %v479_v49  ;;  %v543_v55 = vadd.f32 %v542_v47, %v536_v38 }
 0x2c0   :  { %657 = vst [vmem:[%s970_s7 + $0x18] sm:$0xff] %v496_v51   ;;  %v539_v59 = vunpack.c.l.bf16 %v496_v51  ;;  %v540_v62 = vunpack.c.h.bf16 %v496_v51 }
 0x2c1   :  { %656 = vst [vmem:[%s970_s7 + $0x10] sm:$0xff] %v495_v54   ;;  %v537_v56 = vunpack.c.l.bf16 %v495_v54  ;;  %v538_v57 = vunpack.c.h.bf16 %v495_v54  ;;  %v564_v58 = vadd.f32 %v563_v53, %v557_v52 }
 0x2c2   :  { %v560_v2 = vmul.f32 %v539_v59, %v539_v59  ;;  %v561_v5 = vmul.f32 %v540_v62, %v540_v62 }
 0x2c3   :  { %v544_v60 = vadd.f32 %v543_v55, %v537_v56  ;;  %v558_v61 = vmul.f32 %v537_v56, %v537_v56  ;;  %v559_v0 = vmul.f32 %v538_v57, %v538_v57 }
 0x2c5   :  { %v545_v63 = vadd.f32 %v544_v60, %v538_v57  ;;  %v565_v1 = vadd.f32 %v564_v58, %v558_v61 }
 0x2c7   :  { %v546_v3 = vadd.f32 %v545_v63, %v539_v59  ;;  %v566_v4 = vadd.f32 %v565_v1, %v559_v0 }
 0x2c9   :  { %v547_v6 = vadd.f32 %v546_v3, %v540_v62  ;;  %v567_v7 = vadd.f32 %v566_v4, %v560_v2 }
 0x2cb   :  { %v548_v8 = vrot.slane %v547_v6, 4  ;;  %v568_v9 = vadd.f32 %v567_v7, %v561_v5 }
 0x2cd   :  { %v549_v10 = vadd.f32 %v548_v8, %v547_v6  ;;  %v569_v11 = vrot.slane %v568_v9, 4 }
 0x2cf   :  { %v550_v13 = vrot.slane %v549_v10, 2  ;;  %v570_v14 = vadd.f32 %v569_v11, %v568_v9 }
 0x2d1   :  { %v551_v15 = vadd.f32 %v550_v13, %v549_v10  ;;  %v571_v16 = vrot.slane %v570_v14, 2 }
 0x2d3   :  { %v552_v18 = vrot.slane %v551_v15, 1  ;;  %v572_v19 = vadd.f32 %v571_v16, %v570_v14 }
 0x2d5   :  { %v573_v20 = vrot.slane %v572_v19, 1  ;;  %v553_v21 = vadd.f32 %v552_v18, %v551_v15 }
 0x2d7   :  { %v574_v22 = vadd.f32 %v573_v20, %v572_v19 }
 0x2d9   :  { %v578_v23 = vsel %vm577_vm0, %v553_v21, %v574_v22 }
 0x2da   :  { %579 = vst [vmem:[%s971_s8] sm:$0x3] %v578_v23 }

// kernel: net2d_forward.6
= control target key start
LH: loop header
LB: loop body
LE: loop exit
PB: predicated region body
PF: predicated region fallthrough
CT: control target
= control target key end

     0   :  { %s536_s3 = inlined_call_operand.vmem [shape: bf16[128,128], index: 3, kind: input, shape index: {}]   ;;  %s537_s0 = inlined_call_operand.vmem [shape: bf16[64,128], index: 0, kind: input, shape index: {}]   ;;  %s538_s1 = inlined_call_operand.vmem [shape: f32[1,128], index: 1, kind: input, shape index: {}]   ;;  %s539_s2 = inlined_call_operand.vmem [shape: f32[1,128], index: 2, kind: input, shape index: {}]   ;;  %s540_s4 = inlined_call_operand.vmem [shape: f32[1,128], index: 4, kind: input, shape index: {}]   ;;  %s541_s5 = inlined_call_operand.vmem [shape: bf16[64,128], index: 5, kind: output, shape index: {0}]   ;;  %s542_s6 = inlined_call_operand.vmem [shape: f32[1,2,128], index: 6, kind: output, shape index: {1}]  }
   0x1   :  { %v433_v0 = vld [vmem:[%s536_s3] sm:$0xff]   ;;  %v434_v1 = vld [vmem:[%s536_s3 + $0x8] sm:$0xff]   ;;  %v435_v2 = vld [vmem:[%s536_s3 + $0x10] sm:$0xff]  }
   0x2   :  { %393 = vmatprep.subr.bf16.mxu0 %v433_v0  ;;  %417 = vmatprep.subr.bf16.mxu1 %v433_v0  ;;  %v436_v3 = vld [vmem:[%s536_s3 + $0x18] sm:$0xff]   ;;  %v340_v4 = vld [vmem:[%s537_s0] sm:$0xff]   ;;  %v376_v8 = vld [vmem:[%s537_s0 + $0x10] sm:$0xff]  }
   0x3   :  { %394 = vmatpush3.bf16.msra.mxu0 %v433_v0  ;;  %425 = vmatpush3.bf16.msra.mxu1 %v433_v0  ;;  %v312_v5 = vld [vmem:[%s538_s1] ss:$0 sm:$0xff]  ;;  %v341_v6 = vunpack.c.l.bf16 %v340_v4  ;;  %v342_v7 = vunpack.c.h.bf16 %v340_v4  ;;  %v375_v10 = vld [vmem:[%s537_s0 + $0x8] sm:$0xff]   ;;  %v349_v11 = vunpack.c.l.bf16 %v376_v8  ;;  %v350_v12 = vunpack.c.h.bf16 %v376_v8  ;;  %v377_v15 = vld [vmem:[%s537_s0 + $0x18] sm:$0xff]  }
   0x4   :  { %395 = vmatprep.subr.bf16.mxu0 %v434_v1  ;;  %418 = vmatprep.subr.bf16.mxu1 %v434_v1  ;;  %v313_v9 = vld [vmem:[%s539_s2] ss:$0 sm:$0xff]  ;;  %v345_v20 = vunpack.c.l.bf16 %v375_v10  ;;  %v346_v22 = vunpack.c.h.bf16 %v375_v10  ;;  %v353_v24 = vunpack.c.l.bf16 %v377_v15  ;;  %v354_v25 = vunpack.c.h.bf16 %v377_v15  ;;  %v438_v29 = vld [vmem:[%s536_s3 + $0x28] sm:$0xff]   ;;  %v439_v38 = vld [vmem:[%s536_s3 + $0x30] sm:$0xff]  }
   0x5   :  { %v46_v13 = vmul.f32 %v341_v6, %v312_v5  ;;  %v47_v14 = vmul.f32 %v342_v7, %v312_v5  ;;  %v437_v16 = vld [vmem:[%s536_s3 + $0x20] sm:$0xff]   ;;  %v50_v17 = vmul.f32 %v349_v11, %v312_v5  ;;  %v51_v21 = vmul.f32 %v350_v12, %v312_v5  ;;  %v440_v43 = vld [vmem:[%s536_s3 + $0x38] sm:$0xff]  }
   0x6   :  { %v48_v33 = vmul.f32 %v345_v20, %v312_v5  ;;  %v49_v34 = vmul.f32 %v346_v22, %v312_v5  ;;  %v52_v35 = vmul.f32 %v353_v24, %v312_v5  ;;  %v53_v36 = vmul.f32 %v354_v25, %v312_v5  ;;  %v314_v51 = vld [vmem:[%s540_s4] ss:$0 sm:$0xff] }
   0x7   :  { %396 = vmatpush3.bf16.msra.mxu0 %v434_v1  ;;  %426 = vmatpush3.bf16.msra.mxu1 %v434_v1  ;;  %v61_v18 = vadd.f32 %v313_v9, %v46_v13  ;;  %v62_v19 = vadd.f32 %v313_v9, %v47_v14  ;;  %v65_v23 = vadd.f32 %v313_v9, %v50_v17 }
   0x8   :  { %397 = vmatprep.subr.bf16.mxu0 %v435_v2  ;;  %419 = vmatprep.subr.bf16.mxu1 %v435_v2  ;;  %v66_v28 = vadd.f32 %v313_v9, %v51_v21  ;;  %v63_v39 = vadd.f32 %v313_v9, %v48_v33  ;;  %v64_v40 = vadd.f32 %v313_v9, %v49_v34 }
   0x9   :  { %v69_v26 = vmax.f32 %v61_v18, 0.0  ;;  %v70_v27 = vmax.f32 %v62_v19, 0.0  ;;  %v73_v30 = vmax.f32 %v65_v23, 0.0  ;;  %v67_v41 = vadd.f32 %v313_v9, %v52_v35 }
   0xa   :  { %v74_v32 = vmax.f32 %v66_v28, 0.0  ;;  %v68_v42 = vadd.f32 %v313_v9, %v53_v36  ;;  %v71_v44 = vmax.f32 %v63_v39, 0.0  ;;  %v72_v45 = vmax.f32 %v64_v40, 0.0 }
   0xb   :  { %398 = vmatpush3.bf16.msra.mxu0 %v435_v2  ;;  %427 = vmatpush3.bf16.msra.mxu1 %v435_v2  ;;  %v77_v31 = vpack.c.bf16 %v70_v27, %v69_v26  ;;  %v75_v46 = vmax.f32 %v67_v41, 0.0  ;;  %v299_v40 = vlaneseq }
   0xc   :  { %399 = vmatprep.subr.bf16.mxu0 %v436_v3  ;;  %420 = vmatprep.subr.bf16.mxu1 %v436_v3  ;;  %v79_v37 = vpack.c.bf16 %v74_v32, %v73_v30  ;;  %v76_v47 = vmax.f32 %v68_v42, 0.0  ;;  %v78_v48 = vpack.c.bf16 %v72_v45, %v71_v44 }
   0xd   :  { %409 = vmatprep.mubr.bf16.mxu0 %v77_v31  ;;  %v300_v45 = vshrl.u32 %v299_v40, 7 }
   0xe   :  { %413 = vmatprep.mubr.bf16.mxu1 %v79_v37  ;;  %v80_v49 = vpack.c.bf16 %v76_v47, %v75_v46 }
   0xf   :  { %400 = vmatpush3.bf16.msra.mxu0 %v436_v3  ;;  %428 = vmatpush3.bf16.msra.mxu1 %v436_v3  ;;  %vm301_vm0 = vcmp.eq.s32.totalorder %v300_v45, 0 }
  0x10   :  { %401 = vmatprep.subr.bf16.mxu0 %v437_v16  ;;  %421 = vmatprep.subr.bf16.mxu1 %v437_v16 }
  0x13   :  { %402 = vmatpush3.bf16.msra.mxu0 %v437_v16  ;;  %429 = vmatpush3.bf16.msra.mxu1 %v437_v16 }
  0x14   :  { %403 = vmatprep.subr.bf16.mxu0 %v438_v29  ;;  %422 = vmatprep.subr.bf16.mxu1 %v438_v29 }
  0x17   :  { %404 = vmatpush3.bf16.msra.mxu0 %v438_v29  ;;  %430 = vmatpush3.bf16.msra.mxu1 %v438_v29 }
  0x18   :  { %405 = vmatprep.subr.bf16.mxu0 %v439_v38  ;;  %423 = vmatprep.subr.bf16.mxu1 %v439_v38 }
  0x1b   :  { %406 = vmatpush3.bf16.msra.mxu0 %v439_v38  ;;  %431 = vmatpush3.bf16.msra.mxu1 %v439_v38 }
  0x1c   :  { %407 = vmatprep.subr.bf16.mxu0 %v440_v43  ;;  %424 = vmatprep.subr.bf16.mxu1 %v440_v43 }
  0x1f   :  { %408 = vmatpush3.bf16.msra.mxu0 %v440_v43  ;;  %432 = vmatpush3.bf16.msra.mxu1 %v440_v43 }
  0x22   :  { %410 = vmatmul.mubr.bf16.vlgmr.msra.gmra.mrb[0].mxu0 %v78_v48  ;;  %414 = vmatmul.mubr.bf16.vlgmr.msra.gmra.mrb[0].mxu1 %v80_v49 }
  0xf5   :  { %v411_v50 = vpop.f32.mrb[0].mxu0  ;;  %v415_v52 = vpop.f32.mrb[0].mxu1 }
  0xf6   :  { %v186_v53 = vpop.f32.mrb[1].mxu0  ;;  %v211_v54 = vadd.f32 %v415_v52, %v314_v51  ;;  %v202_v55 = vpop.f32.mrb[1].mxu1  ;;  %v195_v59 = vadd.f32 %v411_v50, %v314_v51 }
  0xf7   :  { %v412_v56 = vpop.f32.mrb[2].mxu0  ;;  %v203_v57 = vadd.f32 %v314_v51, %v202_v55  ;;  %v416_v58 = vpop.f32.mrb[2].mxu1  ;;  %v187_v0 = vadd.f32 %v314_v51, %v186_v53 }
  0xf8   :  { %v198_v60 = vadd.f32 %v412_v56, %v314_v51  ;;  %v189_v61 = vpop.f32.mrb[3].mxu0  ;;  %v214_v62 = vadd.f32 %v416_v58, %v314_v51  ;;  %v205_v63 = vpop.f32.mrb[3].mxu1 }
  0xf9   :  { %v190_v1 = vadd.f32 %v314_v51, %v189_v61  ;;  %v206_v2 = vadd.f32 %v314_v51, %v205_v63 }
  0xfa   :  { %v218_v3 = vpack.c.bf16 %v198_v60, %v195_v59  ;;  %v220_v4 = vpack.c.bf16 %v214_v62, %v211_v54 }
  0xfb   :  { %v217_v5 = vpack.c.bf16 %v190_v1, %v187_v0  ;;  %v219_v6 = vpack.c.bf16 %v206_v2, %v203_v57 }
  0xfc   :  { %378 = vst [vmem:[%s541_s5 + $0x8] sm:$0xff] %v218_v3   ;;  %380 = vst [vmem:[%s541_s5 + $0x18] sm:$0xff] %v220_v4   ;;  %v259_v7 = vunpack.c.l.bf16 %v218_v3  ;;  %v260_v10 = vunpack.c.h.bf16 %v218_v3  ;;  %v263_v22 = vunpack.c.l.bf16 %v220_v4  ;;  %v264_v26 = vunpack.c.h.bf16 %v220_v4 }
  0xfd   :  { %359 = vst [vmem:[%s541_s5] sm:$0xff] %v217_v5   ;;  %v257_v8 = vunpack.c.l.bf16 %v217_v5  ;;  %v258_v9 = vunpack.c.h.bf16 %v217_v5  ;;  %379 = vst [vmem:[%s541_s5 + $0x10] sm:$0xff] %v219_v6   ;;  %v261_v17 = vunpack.c.l.bf16 %v219_v6  ;;  %v262_v20 = vunpack.c.h.bf16 %v219_v6 }
  0xfe   :  { %v280_v14 = vmul.f32 %v259_v7, %v259_v7  ;;  %v281_v18 = vmul.f32 %v260_v10, %v260_v10  ;;  %v284_v30 = vmul.f32 %v263_v22, %v263_v22  ;;  %v285_v33 = vmul.f32 %v264_v26, %v264_v26 }
  0xff   :  { %v265_v11 = vadd.f32 %v258_v9, %v257_v8  ;;  %v278_v12 = vmul.f32 %v257_v8, %v257_v8  ;;  %v279_v13 = vmul.f32 %v258_v9, %v258_v9  ;;  %v282_v24 = vmul.f32 %v261_v17, %v261_v17 }
 0x100   :  { %v283_v28 = vmul.f32 %v262_v20, %v262_v20 }
 0x101   :  { %v266_v15 = vadd.f32 %v265_v11, %v259_v7  ;;  %v286_v16 = vadd.f32 %v279_v13, %v278_v12 }
 0x103   :  { %v287_v19 = vadd.f32 %v286_v16, %v280_v14  ;;  %v267_v21 = vadd.f32 %v266_v15, %v260_v10 }
 0x105   :  { %v268_v23 = vadd.f32 %v267_v21, %v261_v17  ;;  %v288_v25 = vadd.f32 %v287_v19, %v281_v18 }
 0x107   :  { %v269_v27 = vadd.f32 %v268_v23, %v262_v20  ;;  %v289_v29 = vadd.f32 %v288_v25, %v282_v24 }
 0x109   :  { %v270_v31 = vadd.f32 %v269_v27, %v263_v22  ;;  %v290_v32 = vadd.f32 %v289_v29, %v283_v28 }
 0x10b   :  { %v271_v34 = vadd.f32 %v270_v31, %v264_v26  ;;  %v291_v35 = vadd.f32 %v290_v32, %v284_v30 }
 0x10d   :  { %v272_v36 = vrot.slane %v271_v34, 4  ;;  %v292_v37 = vadd.f32 %v291_v35, %v285_v33 }
 0x10f   :  { %v273_v38 = vadd.f32 %v272_v36, %v271_v34  ;;  %v293_v39 = vrot.slane %v292_v37, 4 }
 0x111   :  { %v274_v41 = vrot.slane %v273_v38, 2  ;;  %v294_v42 = vadd.f32 %v293_v39, %v292_v37 }
 0x113   :  { %v275_v43 = vadd.f32 %v274_v41, %v273_v38  ;;  %v295_v44 = vrot.slane %v294_v42, 2 }
 0x115   :  { %v276_v46 = vrot.slane %v275_v43, 1  ;;  %v296_v47 = vadd.f32 %v295_v44, %v294_v42 }
 0x117   :  { %v297_v48 = vrot.slane %v296_v47, 1  ;;  %v277_v49 = vadd.f32 %v276_v46, %v275_v43 }
 0x119   :  { %v298_v50 = vadd.f32 %v297_v48, %v296_v47 }
 0x11b   :  { %v302_v51 = vsel %vm301_vm0, %v277_v49, %v298_v50 }
 0x11c   :  { %303 = vst [vmem:[%s542_s6] sm:$0x3] %v302_v51 }

// kernel: net2d_forward.9
= control target key start
LH: loop header
LB: loop body
LE: loop exit
PB: predicated region body
PF: predicated region fallthrough
CT: control target
= control target key end

     0   :  { %vm361_vm0 = vcmask 31744   ;;  %s645_s3 = inlined_call_operand.vmem [shape: bf16[128,128], index: 3, kind: input, shape index: {}]   ;;  %s646_s0 = inlined_call_operand.vmem [shape: bf16[64,128], index: 0, kind: input, shape index: {}]   ;;  %s647_s1 = inlined_call_operand.vmem [shape: f32[1,128], index: 1, kind: input, shape index: {}]   ;;  %s648_s2 = inlined_call_operand.vmem [shape: f32[1,128], index: 2, kind: input, shape index: {}]   ;;  %s649_s5 = inlined_call_operand.vmem [shape: bf16[128,4], index: 5, kind: input, shape index: {}]   ;;  %s650_s4 = inlined_call_operand.vmem [shape: f32[1,128], index: 4, kind: input, shape index: {}]   ;;  %s651_s6 = inlined_call_operand.vmem [shape: f32[1,4], index: 6, kind: input, shape index: {}]   ;;  %s652_s7 = inlined_call_operand.vmem [shape: f32[64,4], index: 7, kind: output, shape index: {}]  }
   0x1   :  { %v485_v0 = vld [vmem:[%s645_s3] sm:$0xff]   ;;  %v486_v1 = vld [vmem:[%s645_s3 + $0x8] sm:$0xff]   ;;  %v487_v2 = vld [vmem:[%s645_s3 + $0x10] sm:$0xff]  }
   0x2   :  { %437 = vmatprep.subr.bf16.mxu0 %v485_v0  ;;  %v488_v3 = vld [vmem:[%s645_s3 + $0x18] sm:$0xff]   ;;  %v395_v4 = vld [vmem:[%s646_s0] sm:$0xff]   ;;  %v494_v12 = vld [vmem:[%s649_s5 + $0x8] sm:$0xff]  }
   0x3   :  { %438 = vmatpush3.bf16.msra.mxu0 %v485_v0  ;;  %v374_v5 = vld [vmem:[%s647_s1] ss:$0 sm:$0xff]  ;;  %v396_v6 = vunpack.c.l.bf16 %v395_v4  ;;  %v397_v7 = vunpack.c.h.bf16 %v395_v4  ;;  %v410_v16 = vld [vmem:[%s646_s0 + $0x8] sm:$0xff]   ;;  %v411_v18 = vld [vmem:[%s646_s0 + $0x10] sm:$0xff]  }
   0x4   :  { %439 = vmatprep.subr.bf16.mxu0 %v486_v1  ;;  %v375_v8 = vld [vmem:[%s648_s2] ss:$0 sm:$0xff]  ;;  %v490_v17 = vld [vmem:[%s645_s3 + $0x28] sm:$0xff]   ;;  %v495_v20 = vld [vmem:[%s649_s5 + $0x10] sm:$0xff]   ;;  %v400_v21 = vunpack.c.l.bf16 %v410_v16  ;;  %v401_v22 = vunpack.c.h.bf16 %v410_v16  ;;  %v404_v23 = vunpack.c.l.bf16 %v411_v18  ;;  %v405_v24 = vunpack.c.h.bf16 %v411_v18 }
   0x5   :  { %v493_v9 = vld [vmem:[%s649_s5] sm:$0xff]   ;;  %v50_v10 = vmul.f32 %v396_v6, %v374_v5  ;;  %v51_v11 = vmul.f32 %v397_v7, %v374_v5  ;;  %v496_v25 = vld [vmem:[%s649_s5 + $0x18] sm:$0xff]   ;;  %v491_v26 = vld [vmem:[%s645_s3 + $0x30] sm:$0xff]  }
   0x6   :  { %v489_v13 = vld [vmem:[%s645_s3 + $0x20] sm:$0xff]   ;;  %461 = vmatprep.subr.bf16.mxu1 %v493_v9  ;;  %v52_v27 = vmul.f32 %v400_v21, %v374_v5  ;;  %v53_v28 = vmul.f32 %v401_v22, %v374_v5  ;;  %v54_v29 = vmul.f32 %v404_v23, %v374_v5  ;;  %v55_v30 = vmul.f32 %v405_v24, %v374_v5  ;;  %v412_v31 = vld [vmem:[%s646_s0 + $0x18] sm:$0xff]   ;;  %v498_v40 = vld [vmem:[%s649_s5 + $0x28] sm:$0xff]  }
   0x7   :  { %440 = vmatpush3.bf16.msra.mxu0 %v486_v1  ;;  %v65_v14 = vadd.f32 %v375_v8, %v50_v10  ;;  %v66_v15 = vadd.f32 %v375_v8, %v51_v11  ;;  %462 = vmatpush3.bf16.msra.mxu1 %v493_v9  ;;  %v497_v32 = vld [vmem:[%s649_s5 + $0x20] sm:$0xff]   ;;  %v492_v33 = vld [vmem:[%s645_s3 + $0x38] sm:$0xff]   ;;  %v408_v36 = vunpack.c.l.bf16 %v412_v31  ;;  %v409_v37 = vunpack.c.h.bf16 %v412_v31  ;;  %v499_v48 = vld [vmem:[%s649_s5 + $0x30] sm:$0xff]  }
   0x8   :  { %441 = vmatprep.subr.bf16.mxu0 %v487_v2  ;;  %463 = vmatprep.subr.bf16.mxu1 %v494_v12  ;;  %v67_v34 = vadd.f32 %v375_v8, %v52_v27  ;;  %v68_v35 = vadd.f32 %v375_v8, %v53_v28  ;;  %v69_v38 = vadd.f32 %v375_v8, %v54_v29  ;;  %v500_v49 = vld [vmem:[%s649_s5 + $0x38] sm:$0xff]   ;;  %v376_v50 = vld [vmem:[%s650_s4] ss:$0 sm:$0xff] }
   0x9   :  { %v73_v19 = vpack.c.bf16 %v66_v15, %v65_v14  ;;  %v70_v39 = vadd.f32 %v375_v8, %v55_v30  ;;  %v56_v42 = vmul.f32 %v408_v36, %v374_v5  ;;  %v57_v43 = vmul.f32 %v409_v37, %v374_v5  ;;  %v385_v15 = vld [vmem:[%s651_s6] ss:$0 sm:$0xff] }
   0xa   :  { %v74_v41 = vpack.c.bf16 %v68_v35, %v67_v34 }
   0xb   :  { %442 = vmatpush3.bf16.msra.mxu0 %v487_v2  ;;  %453 = vmatprep.mubr.bf16.mxu0 %v73_v19  ;;  %v75_v44 = vpack.c.bf16 %v70_v39, %v69_v38  ;;  %v71_v45 = vadd.f32 %v375_v8, %v56_v42  ;;  %v72_v46 = vadd.f32 %v375_v8, %v57_v43 }
   0xc   :  { %443 = vmatprep.subr.bf16.mxu0 %v488_v3  ;;  %464 = vmatpush3.bf16.msra.mxu1 %v494_v12 }
   0xd   :  { %465 = vmatprep.subr.bf16.mxu1 %v495_v20  ;;  %v76_v47 = vpack.c.bf16 %v72_v46, %v71_v45 }
   0xf   :  { %444 = vmatpush3.bf16.msra.mxu0 %v488_v3 }
  0x10   :  { %445 = vmatprep.subr.bf16.mxu0 %v489_v13  ;;  %466 = vmatpush3.bf16.msra.mxu1 %v495_v20 }
  0x11   :  { %467 = vmatprep.subr.bf16.mxu1 %v496_v25 }
  0x13   :  { %446 = vmatpush3.bf16.msra.mxu0 %v489_v13 }
  0x14   :  { %447 = vmatprep.subr.bf16.mxu0 %v490_v17  ;;  %468 = vmatpush3.bf16.msra.mxu1 %v496_v25 }
  0x15   :  { %469 = vmatprep.subr.bf16.mxu1 %v497_v32 }
  0x17   :  { %448 = vmatpush3.bf16.msra.mxu0 %v490_v17 }
  0x18   :  { %449 = vmatprep.subr.bf16.mxu0 %v491_v26  ;;  %470 = vmatpush3.bf16.msra.mxu1 %v497_v32 }
  0x19   :  { %471 = vmatprep.subr.bf16.mxu1 %v498_v40 }
  0x1b   :  { %450 = vmatpush3.bf16.msra.mxu0 %v491_v26 }
  0x1c   :  { %451 = vmatprep.subr.bf16.mxu0 %v492_v33  ;;  %472 = vmatpush3.bf16.msra.mxu1 %v498_v40 }
  0x1d   :  { %473 = vmatprep.subr.bf16.mxu1 %v499_v48 }
  0x1f   :  { %452 = vmatpush3.bf16.msra.mxu0 %v492_v33 }
  0x20   :  { %474 = vmatpush3.bf16.msra.mxu1 %v499_v48 }
  0x21   :  { %475 = vmatprep.subr.bf16.mxu1 %v500_v49 }
  0x22   :  { %454 = vmatmul.mubr.bf16.vlgmr.msra.gmra.mrb[0].mxu0 %v74_v41 }
  0x23   :  { %457 = vmatprep.mubr.bf16.mxu0 %v75_v44 }
  0x24   :  { %476 = vmatpush3.bf16.msra.mxu1 %v500_v49 }
  0x2a   :  { %458 = vmatmul.mubr.bf16.gmra.mrb[4].mxu0 %v76_v47 }
  0xf5   :  { %v455_v51 = vpop.f32.mrb[0].mxu0 }
  0xf6   :  { %v191_v52 = vadd.f32 %v455_v51, %v376_v50  ;;  %v182_v53 = vpop.f32.mrb[1].mxu0 }
  0xf7   :  { %v183_v54 = vadd.f32 %v376_v50, %v182_v53  ;;  %v456_v55 = vpop.f32.mrb[2].mxu0 }
  0xf8   :  { %v194_v56 = vadd.f32 %v456_v55, %v376_v50  ;;  %v185_v57 = vpop.f32.mrb[3].mxu0  ;;  %v215_v59 = vmax.f32 %v191_v52, 0.0 }
  0xf9   :  { %v186_v58 = vadd.f32 %v376_v50, %v185_v57  ;;  %v213_v61 = vmax.f32 %v183_v54, 0.0 }
  0xfa   :  { %v216_v60 = vmax.f32 %v194_v56, 0.0 }
  0xfb   :  { %v214_v62 = vmax.f32 %v186_v58, 0.0 }
  0xfc   :  { %v222_v63 = vpack.c.bf16 %v216_v60, %v215_v59 }
  0xfd   :  { %v459_v0 = vpop.f32.mrb[4].mxu0  ;;  %v221_v1 = vpack.c.bf16 %v214_v62, %v213_v61 }
  0xfe   :  { %v207_v2 = vadd.f32 %v459_v0, %v376_v50  ;;  %v198_v3 = vpop.f32.mrb[5].mxu0 }
  0xff   :  { %v199_v4 = vadd.f32 %v376_v50, %v198_v3  ;;  %v460_v5 = vpop.f32.mrb[6].mxu0  ;;  %477 = vmatprep.mubr.bf16.mxu1 %v221_v1 }
 0x100   :  { %v210_v6 = vadd.f32 %v460_v5, %v376_v50  ;;  %v201_v7 = vpop.f32.mrb[7].mxu0  ;;  %478 = vmatmul.mubr.bf16.vlgmr.msra.gmra.mrb[0].mxu1 %v222_v63  ;;  %v219_v9 = vmax.f32 %v207_v2, 0.0 }
 0x101   :  { %v202_v8 = vadd.f32 %v376_v50, %v201_v7  ;;  %v217_v11 = vmax.f32 %v199_v4, 0.0 }
 0x102   :  { %v220_v10 = vmax.f32 %v210_v6, 0.0 }
 0x103   :  { %v218_v12 = vmax.f32 %v202_v8, 0.0 }
 0x104   :  { %v224_v13 = vpack.c.bf16 %v220_v10, %v219_v9 }
 0x105   :  { %v223_v14 = vpack.c.bf16 %v218_v12, %v217_v11 }
 0x107   :  { %481 = vmatprep.mubr.bf16.mxu1 %v223_v14 }
 0x108   :  { %482 = vmatmul.mubr.bf16.gmra.mrb[4].mxu1 %v224_v13 }
 0x1d3   :  { %v479_v16 = vpop.f32.mrb[0].mxu1 }
 0x1d4   :  { %v339_v17 = vadd.f32 %v479_v16, %v385_v15  ;;  %v330_v18 = vpop.f32.mrb[1].mxu1 }
 0x1d5   :  { %v331_v19 = vadd.f32 %v385_v15, %v330_v18  ;;  %v480_v20 = vpop.f32.mrb[2].mxu1 }
 0x1d6   :  { %364 = vst.msk [vmem:[%s652_s7 + $0x10] sm:$0xff] %vm361_vm0, %v339_v17  ;;  %v342_v21 = vadd.f32 %v480_v20, %v385_v15  ;;  %v333_v22 = vpop.f32.mrb[3].mxu1 }
 0x1d7   :  { %362 = vst.msk [vmem:[%s652_s7] sm:$0xff] %vm361_vm0, %v331_v19  ;;  %v334_v23 = vadd.f32 %v385_v15, %v333_v22 }
 0x1d8   :  { %365 = vst.msk [vmem:[%s652_s7 + $0x18] sm:$0xff] %vm361_vm0, %v342_v21 }
 0x1d9   :  { %363 = vst.msk [vmem:[%s652_s7 + $0x8] sm:$0xff] %vm361_vm0, %v334_v23 }
 0x1db   :  { %v483_v24 = vpop.f32.mrb[4].mxu1 }
 0x1dc   :  { %v355_v25 = vadd.f32 %v483_v24, %v385_v15  ;;  %v346_v26 = vpop.f32.mrb[5].mxu1 }
 0x1dd   :  { %v347_v27 = vadd.f32 %v385_v15, %v346_v26  ;;  %v484_v28 = vpop.f32.mrb[6].mxu1 }
 0x1de   :  { %368 = vst.msk [vmem:[%s652_s7 + $0x30] sm:$0xff] %vm361_vm0, %v355_v25  ;;  %v358_v29 = vadd.f32 %v484_v28, %v385_v15  ;;  %v349_v30 = vpop.f32.mrb[7].mxu1 }
 0x1df   :  { %366 = vst.msk [vmem:[%s652_s7 + $0x20] sm:$0xff] %vm361_vm0, %v347_v27  ;;  %v350_v31 = vadd.f32 %v385_v15, %v349_v30 }
 0x1e0   :  { %369 = vst.msk [vmem:[%s652_s7 + $0x38] sm:$0xff] %vm361_vm0, %v358_v29 }
 0x1e1   :  { %367 = vst.msk [vmem:[%s652_s7 + $0x28] sm:$0xff] %vm361_vm0, %v350_v31 }

</bundles_post_ra>
